<compile_context>
chip_gen: v7x
topology: tpu7x:2x2x1
jax: 0.10.0
libtpu: 0.0.40
codegen_flags: <defaults>
</compile_context>

<pallas_src>
import jax
import jax.numpy as jnp
from jax.experimental import pallas as pl
from jax.experimental.pallas import tpu as pltpu


def _round_up(x: int, m: int) -> int:
    return ((x + m - 1) // m) * m


# Padded weights (in compute-dtype bytes) below this stay fully VMEM-resident.
_RESIDENT_WEIGHT_BYTES = 8 * 1024 * 1024
# Working-set budget that is safe on every TPU generation (v7x: 64 MiB / TC).
_VMEM_BUDGET = 32 * 1024 * 1024


# ---------------------------------------------------------------------------
# Kernels
# ---------------------------------------------------------------------------
def _logreg_kernel_resident(x_ref, w_ref, b_ref, o_ref):
    """Weight fully VMEM-resident; 1-D grid over batch tiles.

    x_ref: (TB, d_in)       bf16   (streamed per batch tile)
    w_ref: (d_in, d_out_p)  bf16   (constant block -> DMA'd from HBM once)
    b_ref: (1, d_out_p)     f32
    o_ref: (TB, d_out_p)    f32
    """
    z = jnp.dot(x_ref[...], w_ref[...], preferred_element_type=jnp.float32)
    z = z + b_ref[...]                       # bias broadcast over rows, in f32
    o_ref[...] = jax.nn.sigmoid(z).astype(o_ref.dtype)


def _logreg_kernel_ktiled(x_ref, w_ref, b_ref, o_ref, acc_ref):
    """Fallback for very large input_dim: K-tiled with an f32 accumulator."""
    k = pl.program_id(1)

    @pl.when(k == 0)
    def _():
        acc_ref[...] = jnp.zeros_like(acc_ref)

    acc_ref[...] += jnp.dot(x_ref[...], w_ref[...],
                            preferred_element_type=jnp.float32)

    @pl.when(k == pl.num_programs(1) - 1)
    def _():
        z = acc_ref[...] + b_ref[...]
        o_ref[...] = jax.nn.sigmoid(z).astype(o_ref.dtype)


# ---------------------------------------------------------------------------
# Wrapper
# ---------------------------------------------------------------------------
def _choose_batch_tile(B: int, row_bytes: int, fixed_bytes: int) -> int:
    """Batch tile: multiple of 8, >= 2 grid steps when B > 8 (keeps both v7x
    TensorCores busy), double-buffered working set within the VMEM budget."""
    if B <= 8:
        return B
    steps = 4 if B >= 64 else 2
    tb = min(1024, max(8, _round_up(pl.cdiv(B, steps), 8)))
    while tb > 8 and fixed_bytes + 2 * tb * row_bytes > _VMEM_BUDGET:
        tb = max(8, tb // 2)
    return tb


def logistic_regression_forward(x, weight, bias, *, compute_dtype=jnp.bfloat16):
    """sigmoid(x @ weight.T + bias) as a single Pallas TPU kernel.

    x:      (B, input_dim)
    weight: (output_dim, input_dim)   (PyTorch nn.Linear layout)
    bias:   (output_dim,)
    returns (B, output_dim) float32
    """
    B, d_in = x.shape
    d_out = weight.shape[0]
    itemsize = jnp.dtype(compute_dtype).itemsize

    # Lane-dense output / weight N width (multiple of 128).
    d_out_p = _round_up(d_out, 128)

    # ---- one-time parameter prep ------------------------------------------
    # NOTE: under jit with constant params this pad/transpose/cast folds away;
    # on a hot serving path, do it once at parameter-load time instead.
    w_t = jnp.pad(weight.astype(compute_dtype).T,
                  ((0, 0), (0, d_out_p - d_out)))                # (d_in, d_out_p)
    b2 = jnp.pad(bias.astype(jnp.float32),
                 (0, d_out_p - d_out)).reshape(1, d_out_p)
    x_c = x.astype(compute_dtype)

    weight_bytes = d_in * d_out_p * itemsize
    resident = weight_bytes <= _RESIDENT_WEIGHT_BYTES

    if resident:
        # -------- main path: weight VMEM-resident, 1-D batch grid ----------
        row_bytes = d_in * itemsize + d_out_p * 4        # x row + out row
        fixed_bytes = 2 * weight_bytes + d_out_p * 4     # weight bufs + bias
        TB = _choose_batch_tile(B, row_bytes, fixed_bytes)
        grid = (pl.cdiv(B, TB),)

        kernel = _logreg_kernel_resident
        in_specs = [
            pl.BlockSpec((TB, d_in), lambda i: (i, 0)),          # x: streamed
            pl.BlockSpec((d_in, d_out_p), lambda i: (0, 0)),     # W^T: resident
            pl.BlockSpec((1, d_out_p), lambda i: (0, 0)),        # bias
        ]
        out_specs = pl.BlockSpec((TB, d_out_p), lambda i: (i, 0))
        scratch_shapes = []
        dim_semantics = ("parallel",)
        weight_reads = 1
        k_total = d_in
    else:
        # -------- fallback: very large input_dim, K-tiled accumulator ------
        d_in_p = _round_up(d_in, 128)      # zero-pad K: no-op for the dot
        TK = 1024
        while d_in_p % TK != 0:
            TK //= 2                       # terminates at 128 (d_in_p % 128 == 0)
        x_c = jnp.pad(x_c, ((0, 0), (0, d_in_p - d_in)))
        w_t = jnp.pad(w_t, ((0, d_in_p - d_in), (0, 0)))

        row_bytes = TK * itemsize + 3 * d_out_p * 4      # x + out + f32 acc rows
        fixed_bytes = 2 * TK * d_out_p * itemsize + d_out_p * 4
        TB = _choose_batch_tile(B, row_bytes, fixed_bytes)
        grid = (pl.cdiv(B, TB), d_in_p // TK)

        kernel = _logreg_kernel_ktiled
        in_specs = [
            pl.BlockSpec((TB, TK), lambda i, k: (i, k)),
            pl.BlockSpec((TK, d_out_p), lambda i, k: (k, 0)),
            pl.BlockSpec((1, d_out_p), lambda i, k: (0, 0)),
        ]
        out_specs = pl.BlockSpec((TB, d_out_p), lambda i, k: (i, 0))
        scratch_shapes = [pltpu.VMEM((TB, d_out_p), jnp.float32)]
        dim_semantics = ("parallel", "arbitrary")
        weight_reads = pl.cdiv(B, TB)      # weight re-streamed per batch tile
        k_total = d_in_p

    # VMEM limit: enough for this working set, capped at 48 MiB so the same
    # config compiles on v7x (64 MiB physical) as well as v5e/v6e (128 MiB).
    vmem_limit = min(48 * 1024 * 1024,
                     max(32 * 1024 * 1024,
                         int(1.25 * (fixed_bytes + 2 * TB * row_bytes))))

    cost = pl.CostEstimate(
        flops=2 * B * k_total * d_out_p,
        transcendentals=B * d_out_p,
        bytes_accessed=(B * k_total * itemsize                     # x (bf16)
                        + weight_reads * k_total * d_out_p * itemsize
                        + B * d_out_p * 4                          # out (f32)
                        + d_out_p * 4),                            # bias
    )

    out_p = pl.pallas_call(
        kernel,
        out_shape=jax.ShapeDtypeStruct((B, d_out_p), jnp.float32),
        grid_spec=pltpu.PrefetchScalarGridSpec(
            num_scalar_prefetch=0,
            grid=grid,
            in_specs=in_specs,
            out_specs=out_specs,
            scratch_shapes=scratch_shapes,
        ),
        compiler_params=pltpu.CompilerParams(
            dimension_semantics=dim_semantics,
            vmem_limit_bytes=vmem_limit,
        ),
        cost_estimate=cost,
    )(x_c, w_t, b2)

    # Slice the padded lanes back off.
    return out_p[:, :d_out] if d_out_p != d_out else out_p


if __name__ == "__main__":
    # Small, deterministic example: batch=8, input_dim=32, output_dim=8
    key = jax.random.PRNGKey(0)
    k_x, k_w, k_b = jax.random.split(key, 3)

    B, input_dim, output_dim = 8, 32, 8

    x = jax.random.normal(k_x, (B, input_dim), dtype=jnp.float32)
    bound = 1.0 / (input_dim ** 0.5)
    weight = jax.random.uniform(
        k_w, (output_dim, input_dim), minval=-bound, maxval=bound,
        dtype=jnp.float32)
    bias = jax.random.uniform(
        k_b, (output_dim,), minval=-bound, maxval=bound, dtype=jnp.float32)

    fwd = jax.jit(logistic_regression_forward)
    out = jax.block_until_ready(fwd(x, weight, bias))

    # References: bf16-matched (tight check) and pure f32 (loose check --
    # difference is only the bf16 cast of x/weight; accumulation is f32).
    ref_bf16 = jax.nn.sigmoid(
        jnp.dot(x.astype(jnp.bfloat16), weight.astype(jnp.bfloat16).T,
                preferred_element_type=jnp.float32) + bias)
    ref_f32 = jax.nn.sigmoid(x @ weight.T + bias)

    assert out.shape == (B, output_dim)
    assert out.dtype == jnp.float32
    assert jnp.allclose(out, ref_bf16, atol=1e-3, rtol=1e-3)
    assert jnp.allclose(out, ref_f32, atol=2e-2, rtol=2e-2)

    print("KERNEL_OK")
</pallas_src>

<mosaic_0001>
module attributes {stable_mosaic.version = 11 : i64} {
  func.func @_logreg_kernel_resident(%arg0: i32, %arg1: memref<8x32xbf16, #tpu.memory_space<vmem>>, %arg2: memref<32x128xbf16, #tpu.memory_space<vmem>>, %arg3: memref<1x128xf32, #tpu.memory_space<vmem>>, %arg4: memref<8x128xf32, #tpu.memory_space<vmem>>) attributes {dimension_semantics = [#tpu.dimension_semantics<parallel>], iteration_bounds = array<i64: 1>, scalar_prefetch = 0 : i64, scratch_operands = 0 : i64, tpu.core_type = #tpu.core_type<tc>, window_params = [{transform_indices = @transform_0, window_bounds = array<i64: 8, 32>}, {pipeline_mode = #tpu.pipeline_mode<synchronous>, transform_indices = @transform_1, window_bounds = array<i64: 32, 128>}, {pipeline_mode = #tpu.pipeline_mode<synchronous>, transform_indices = @transform_2, window_bounds = array<i64: 1, 128>}, {transform_indices = @transform_3, window_bounds = array<i64: 8, 128>}]} {
    %c0 = arith.constant 0 : index
    %c0_0 = arith.constant 0 : index
    %0 = vector.load %arg1[%c0, %c0_0] : memref<8x32xbf16, #tpu.memory_space<vmem>>, vector<8x32xbf16>
    %c0_1 = arith.constant 0 : index
    %c0_2 = arith.constant 0 : index
    %1 = vector.load %arg2[%c0_1, %c0_2] : memref<32x128xbf16, #tpu.memory_space<vmem>>, vector<32x128xbf16>
    %cst = arith.constant dense<0.000000e+00> : vector<8x128xf32>
    %2 = tpu.matmul %0, %1, %cst {dimension_numbers = #tpu.dot_dimension_numbers<[1], [0], [0], [1], [0, 0, 1, 1], [], []>} : vector<8x32xbf16>, vector<32x128xbf16>, vector<8x128xf32> -> vector<8x128xf32>
    %c0_3 = arith.constant 0 : index
    %c0_4 = arith.constant 0 : index
    %3 = vector.load %arg3[%c0_3, %c0_4] : memref<1x128xf32, #tpu.memory_space<vmem>>, vector<1x128xf32>
    %4 = vector.broadcast %3 : vector<1x128xf32> to vector<8x128xf32>
    %5 = arith.addf %2, %4 : vector<8x128xf32>
    %6 = arith.negf %5 : vector<8x128xf32>
    %7 = math.exp %6 : vector<8x128xf32>
    %cst_5 = arith.constant 1.000000e+00 : f32
    %8 = vector.broadcast %cst_5 : f32 to vector<8x128xf32>
    %9 = arith.addf %8, %7 : vector<8x128xf32>
    %10 = arith.divf %8, %9 : vector<8x128xf32>
    %c0_6 = arith.constant 0 : index
    %c0_7 = arith.constant 0 : index
    %11 = vector.load %arg4[%c0_6, %c0_7] : memref<8x128xf32, #tpu.memory_space<vmem>>, vector<8x128xf32>
    tpu.vector_store %arg4[%c0_6, %c0_7], %10 {strides = array<i32>} : memref<8x128xf32, #tpu.memory_space<vmem>>, vector<8x128xf32>,
    return
  }
  func.func @transform_0(%arg0: i32) -> (i32, i32) {
    %c0_i32 = arith.constant 0 : i32
    %c0_i32_0 = arith.constant 0 : i32
    return %arg0, %c0_i32 : i32, i32
  }
  func.func @transform_1(%arg0: i32) -> (i32, i32) {
    %c0_i32 = arith.constant 0 : i32
    %c0_i32_0 = arith.constant 0 : i32
    %c0_i32_1 = arith.constant 0 : i32
    return %c0_i32, %c0_i32_0 : i32, i32
  }
  func.func @transform_2(%arg0: i32) -> (i32, i32) {
    %c0_i32 = arith.constant 0 : i32
    %c0_i32_0 = arith.constant 0 : i32
    %c0_i32_1 = arith.constant 0 : i32
    return %c0_i32, %c0_i32_0 : i32, i32
  }
  func.func @transform_3(%arg0: i32) -> (i32, i32) {
    %c0_i32 = arith.constant 0 : i32
    %c0_i32_0 = arith.constant 0 : i32
    return %arg0, %c0_i32 : i32, i32
  }
}

</mosaic_0001>

<bundles_post_ra>
// kernel: logistic_regression_forward.1
= control target key start
LH: loop header
LB: loop body
LE: loop exit
PB: predicated region body
PF: predicated region fallthrough
CT: control target
= control target key end

     0   :  { %v154_v1 = vmov 0.0   ;;  %vm155_vm0 = vmmov 0   ;;  %s201_s0 = inlined_call_operand.vmem [shape: bf16[8,32], index: 0, kind: input, shape index: {}]   ;;  %s202_s1 = inlined_call_operand.vmem [shape: bf16[32,128], index: 1, kind: input, shape index: {}]   ;;  %s203_s2 = inlined_call_operand.vmem [shape: f32[1,128], index: 2, kind: input, shape index: {}]   ;;  %s204_s3 = inlined_call_operand.hbm [shape: f32[8,128], index: 3, kind: output, shape index: {}]  }
   0x1   :  { %v124_v0 = vld [vmem:[%s202_s1] sm:$0xff]   ;;  %113 = vmatprep.subr.bf16.mxu0 %v154_v1  ;;  %v125_v2 = vld [vmem:[%s202_s1 + $0x8] sm:$0xff]   ;;  %117 = vmatprep.mubr.msk.bf16.mxu0 %vm155_vm0, %v154_v1 }
   0x2   :  { %114 = vmatpush3.bf16.msra.mxu0 %v124_v0 }
   0x3   :  { %115 = vmatprep.subr.bf16.mxu0 %v154_v1 }
   0x4   :  { %8 = vsyncpa [#allocation3], 0  ;;  %v16_v3 = vld [vmem:[%s201_s0] sm:$0xf]  ;;  %vm40_vm1 = vcmask 261120   ;;  %s156_s1 = smov [#allocation2]  }
   0x5   :  { %v105_v4 = vld [vmem:[%s203_s2] ss:$0 sm:$0xff]  ;;  %s97_s20 = sshll.u32 %s156_s1, 4  ;;  %s98_s20 = int_to_ptr.vmem [resolvable:$true] %s97_s20 }
   0x6   :  { %116 = vmatpush3.bf16.msra.mxu0 %v125_v2  ;;  %s130_s0 = scalar_lea.vmem %s98_s20, 128  ;;  %p135_p1 = scmp.lt.s32.totalorder %s98_s20, %s98_s20 }
   0x7   :  { %p131_p0 = scmp.ne.s32.totalorder %s98_s20, %s130_s0  ;;  %p136_p2 = scmp.lt.s32.totalorder %s130_s0, %s130_s0 }
   0x9   :  { %118 = vmatmul.mubr.msk.bf16.vlgmr.msra.gmra.mrb[0].mxu0 %vm40_vm1, %v16_v3  ;;  %p137_p3 = por %p136_p2, %p135_p1 }
   0xb   :  { %p138_p4 = pnand %p137_p3, %p131_p0 }
  0xdc   :  { %v78_v5 = vpop.f32.mrb[0].mxu0 }
  0xdd   :  { %v79_v6 = vadd.f32 %v105_v4, %v78_v5  ;;  %v119_v7 = vpop.f32.mrb[1].mxu0 }
  0xde   :  { %v81_v8 = vpop.f32.mrb[2].mxu0 }
  0xdf   :  { %v109_v9 = vmul.f32 -1.442695, %v79_v6  ;;  %v120_v10 = vpop.f32.mrb[3].mxu0 }
  0xe1   :  { %126 = vpow2.f32 %v109_v9 }
  0xeb   :  { %v127_v11 = vpop.eup %126 }
  0xec   :  { %v87_v12 = vadd.f32 1.0, %v127_v11 }
  0xee   :  { %128 = vrcp.f32 %v87_v12 }
  0xf8   :  { %v129_v13 = vpop.eup %128 }
  0xf9   :  { %90 = vst [vmem:[#allocation2] sm:$0xff] %v129_v13 }
  0xfa   :  { %141 = shalt.err (!%p138_p4)
}
  0xfb   :  { %s142_s22 = scalar_lea.hbm %s204_s3, 128 }
  0xfc   :  { %p143_p5 = scmp.ne.s32.totalorder %s204_s3, %s142_s22  ;;  %p146_p6 = scmp.lt.u32.totalorder %s142_s22, %s204_s3 }
  0xfe   :  { %p148_p7 = pnand %p146_p6, %p143_p5 }
 0x100   :  { %151 = shalt.err (!%p148_p7)
}
 0x101   :  { %100 = dma.vmem_to_hbm [thread:$0]  %s98_s20, 128, %s204_s3, [#allocation3]  }
 0x102   :  { %152 = dma.done.wait [#allocation3], 128  }
 0x103   :  { %153 = vsyncadd [#allocation3], 4294967168 }
 0x104   :  { %104 = vsyncpa [#allocation3], 1 }

</bundles_post_ra>
